<compile_context>
chip_gen: v5e
topology: v5e:2x2
jax: 0.10.0
libtpu: 0.0.40
codegen_flags: <defaults>
</compile_context>

<pallas_src>
import functools

import jax
import jax.numpy as jnp
from jax.experimental import pallas as pl
from jax.experimental.pallas import tpu as pltpu

BN_EPS = 1e-5


def _round_up(x, m):
    return ((x + m - 1) // m) * m


def _hw_tiling(hw):
    """Lane tiling of a flattened H*W axis: (tile, padded size, num tiles)."""
    thw = min(2048, _round_up(hw, 128))
    hwp = _round_up(hw, thw)
    return thw, hwp, hwp // thw


# ----------------------------------------------------------------------------
# Pallas kernels
# ----------------------------------------------------------------------------
def _conv_mm_kernel(w_ref, p_ref, s_ref, b_ref, o_ref, *, act):
    # [Cout, K] @ [K, TM]  ->  lane-dense [Cout, TM] output (spatial on lanes).
    acc = jnp.dot(w_ref[...], p_ref[0], preferred_element_type=jnp.float32)
    acc = acc * s_ref[...] + b_ref[...]          # folded BN / bias, f32 epilogue
    if act == "relu":
        acc = jnp.maximum(acc, 0.0)
    elif act == "sigmoid":
        acc = jax.nn.sigmoid(acc)
    elif act == "tanh":
        acc = jnp.tanh(acc)
    o_ref[0] = acc


def pallas_conv_matmul(patches, w_flat, scale, bias, act):
    """act(scale * (W @ P) + bias).  patches:[B,K,M], w_flat:[Cout,K] -> [B,Cout,M]."""
    B, K, M = patches.shape
    Cout = w_flat.shape[0]
    TM = min(1024, _round_up(M, 128))
    Mp = _round_up(M, TM)
    p = patches
    if Mp != M:
        p = jnp.pad(p, ((0, 0), (0, 0), (0, Mp - M)))
    p = p.astype(jnp.bfloat16)                    # bf16 MXU inputs, f32 accumulation
    wb = w_flat.astype(jnp.bfloat16)
    s2 = scale.reshape(Cout, 1).astype(jnp.float32)
    b2 = bias.reshape(Cout, 1).astype(jnp.float32)
    out = pl.pallas_call(
        functools.partial(_conv_mm_kernel, act=act),
        out_shape=jax.ShapeDtypeStruct((B, Cout, Mp), jnp.float32),
        grid=(B, Mp // TM),
        in_specs=[
            pl.BlockSpec((Cout, K), lambda b, m: (0, 0)),
            pl.BlockSpec((1, K, TM), lambda b, m: (b, 0, m)),
            pl.BlockSpec((Cout, 1), lambda b, m: (0, 0)),
            pl.BlockSpec((Cout, 1), lambda b, m: (0, 0)),
        ],
        out_specs=pl.BlockSpec((1, Cout, TM), lambda b, m: (b, 0, m)),
        compiler_params=pltpu.CompilerParams(
            dimension_semantics=("parallel", "parallel"),
            vmem_limit_bytes=64 * 1024 * 1024),
    )(wb, p, s2, b2)
    return out[:, :, :M]


def _softmax_reg_kernel(s_ref, d_ref, depth_ref, conf_ref):
    s = s_ref[0]                                    # [D, THW]
    m = jnp.max(s, axis=0, keepdims=True)
    e = jnp.exp(s - m)
    z = jnp.sum(e, axis=0, keepdims=True)
    inv_z = pl.reciprocal(z, approx=True)           # one EUP reciprocal per column
    depth_ref[0] = jnp.sum(e * d_ref[0], axis=0, keepdims=True) * inv_z
    conf_ref[0] = jnp.max(e, axis=0, keepdims=True) * inv_z


@jax.jit
def pallas_softmax_depth_conf(score, depth_vals):
    """softmax(dim=1) + depth regression + max-probability confidence, fused & HW-tiled."""
    B, D, H, W = score.shape
    HW = H * W
    thw, hwp, nT = _hw_tiling(HW)
    s = score.reshape(B, D, HW)
    dv = depth_vals.reshape(B, D, HW)
    if hwp != HW:
        s = jnp.pad(s, ((0, 0), (0, 0), (0, hwp - HW)))
        dv = jnp.pad(dv, ((0, 0), (0, 0), (0, hwp - HW)))
    depth, conf = pl.pallas_call(
        _softmax_reg_kernel,
        out_shape=(jax.ShapeDtypeStruct((B, 1, hwp), jnp.float32),
                   jax.ShapeDtypeStruct((B, 1, hwp), jnp.float32)),
        grid=(B, nT),
        in_specs=[pl.BlockSpec((1, D, thw), lambda b, t: (b, 0, t)),
                  pl.BlockSpec((1, D, thw), lambda b, t: (b, 0, t))],
        out_specs=(pl.BlockSpec((1, 1, thw), lambda b, t: (b, 0, t)),
                   pl.BlockSpec((1, 1, thw), lambda b, t: (b, 0, t))),
        compiler_params=pltpu.CompilerParams(
            dimension_semantics=("parallel", "parallel")),
    )(s, dv)
    return depth[:, 0, :HW].reshape(B, H, W), conf[:, 0, :HW].reshape(B, H, W)


def _prod_mean_kernel(r_ref, w_ref, mean_ref):
    p = r_ref[0] * w_ref[0]                         # [C, THW]
    mean_ref[0, 0] = jnp.mean(p, axis=0, keepdims=True)


@jax.jit
def pallas_prod_mean(ref_fea, warped):
    """Channel-mean of ref_volume * warped_volume (product never hits HBM)."""
    B, C, D, H, W = warped.shape
    HW = H * W
    thw, hwp, nT = _hw_tiling(HW)
    r = ref_fea.reshape(B, C, HW)
    wv = warped.reshape(B, C, D, HW)
    if hwp != HW:
        r = jnp.pad(r, ((0, 0), (0, 0), (0, hwp - HW)))
        wv = jnp.pad(wv, ((0, 0), (0, 0), (0, 0), (0, hwp - HW)))
    wv = wv.reshape(B, C, D * hwp)                  # no transpose; blocked DMA indexes D
    mean = pl.pallas_call(
        _prod_mean_kernel,
        out_shape=jax.ShapeDtypeStruct((B, D, 1, hwp), jnp.float32),
        grid=(B, D, nT),
        in_specs=[pl.BlockSpec((1, C, thw), lambda b, d, t: (b, 0, t)),
                  pl.BlockSpec((1, C, thw), lambda b, d, t: (b, 0, d * nT + t))],
        out_specs=pl.BlockSpec((1, 1, 1, thw), lambda b, d, t: (b, d, 0, t)),
        compiler_params=pltpu.CompilerParams(
            dimension_semantics=("parallel", "parallel", "parallel")),
    )(r, wv)
    return mean[:, :, 0, :HW].reshape(B, D, H, W)


def _fused_accum_kernel(f_ref, r_ref, w_ref, g_ref, o_ref):
    # fused += ref * warped * weight  (single streaming pass per source view)
    o_ref[0, 0] = f_ref[0, 0] + r_ref[0] * w_ref[0] * g_ref[0]


@jax.jit
def pallas_fused_accum(fused, ref_fea, warped, weight):
    """In-place visibility-weighted volume accumulation (fused is aliased in/out)."""
    B, C, D, H, W = warped.shape
    HW = H * W
    thw, hwp, nT = _hw_tiling(HW)
    r = ref_fea.reshape(B, C, HW)
    wv = warped.reshape(B, C, D, HW)
    g = weight.reshape(B, 1, HW)
    if hwp != HW:
        r = jnp.pad(r, ((0, 0), (0, 0), (0, hwp - HW)))
        wv = jnp.pad(wv, ((0, 0), (0, 0), (0, 0), (0, hwp - HW)))
        g = jnp.pad(g, ((0, 0), (0, 0), (0, hwp - HW)))
    wv = wv.reshape(B, C, D * hwp)
    return pl.pallas_call(
        _fused_accum_kernel,
        out_shape=jax.ShapeDtypeStruct((B, D, C, hwp), jnp.float32),
        grid=(B, D, nT),
        in_specs=[pl.BlockSpec((1, 1, C, thw), lambda b, d, t: (b, d, 0, t)),
                  pl.BlockSpec((1, C, thw), lambda b, d, t: (b, 0, t)),
                  pl.BlockSpec((1, C, thw), lambda b, d, t: (b, 0, d * nT + t)),
                  pl.BlockSpec((1, 1, thw), lambda b, d, t: (b, 0, t))],
        out_specs=pl.BlockSpec((1, 1, C, thw), lambda b, d, t: (b, d, 0, t)),
        input_output_aliases={0: 0},
        compiler_params=pltpu.CompilerParams(
            dimension_semantics=("parallel", "parallel", "parallel")),
    )(fused, r, wv, g)


# ----------------------------------------------------------------------------
# Conv / deconv wrappers (patch building in JAX, lane-dense matmul in Pallas)
# ----------------------------------------------------------------------------
def _patches_nchw(x, kh, kw, stride, pad):
    """[B,Cin,H,W] -> [B, Cin*kh*kw, Ho*Wo] (no transposes)."""
    B, C, H, W = x.shape
    if kh == 1 and kw == 1 and stride == 1 and pad == 0:
        return x.reshape(B, C, H * W), H, W
    xp = jnp.pad(x, ((0, 0), (0, 0), (pad, pad), (pad, pad)))
    Ho = (H + 2 * pad - kh) // stride + 1
    Wo = (W + 2 * pad - kw) // stride + 1
    cols = []
    for i in range(kh):
        for j in range(kw):
            cols.append(xp[:, :, i:i + stride * (Ho - 1) + 1:stride,
                           j:j + stride * (Wo - 1) + 1:stride])
    p = jnp.stack(cols, axis=2)                       # [B, Cin, kh*kw, Ho, Wo]
    return p.reshape(B, C * kh * kw, Ho * Wo), Ho, Wo


@functools.partial(jax.jit, static_argnames=("stride", "pad", "act"))
def conv2d(x, w, scale, bias, stride, pad, act):
    # x: [B, Cin, H, W], w: [Cout, Cin, kh, kw]  (torch Conv2d layout), NCHW throughout.
    Cout, Cin, kh, kw = w.shape
    patches, Ho, Wo = _patches_nchw(x, kh, kw, stride, pad)
    y = pallas_conv_matmul(patches, w.reshape(Cout, Cin * kh * kw), scale, bias, act)
    return y.reshape(x.shape[0], Cout, Ho, Wo)


def _pack_deconv_s2_weight(w):
    """ConvTranspose2d(k=3,s=2,p=1,op=1) weight [Cin,Cout,3,3] -> sub-pixel conv
    weight [4*Cout, Cin, 2, 2] (output channel = parity*Cout + co)."""
    Cin, Cout = w.shape[0], w.shape[1]
    wp = jnp.zeros((4, Cout, Cin, 2, 2), jnp.float32)
    for a in range(2):
        for bb in range(2):
            for di in range(2):
                for dj in range(2):
                    ki, kj = a + 1 - 2 * di, bb + 1 - 2 * dj
                    if 0 <= ki <= 2 and 0 <= kj <= 2:
                        wp = wp.at[2 * a + bb, :, :, di, dj].set(w[:, :, ki, kj].T)
    return wp.reshape(4 * Cout, Cin, 2, 2)


@functools.partial(jax.jit, static_argnames=("act",))
def conv_transpose2d_s2(x, w_packed, scale4, bias4, act):
    """Sub-pixel form of ConvTranspose2d(k=3, stride=2, padding=1, output_padding=1)."""
    B, Cin, H, W = x.shape
    Cout = w_packed.shape[0] // 4
    xp = jnp.pad(x, ((0, 0), (0, 0), (0, 1), (0, 1)))      # bottom/right halo
    y = conv2d(xp, w_packed, scale4, bias4, 1, 0, act)      # [B, 4*Cout, H, W]
    y = y.reshape(B, 2, 2, Cout, H, W).transpose(0, 3, 4, 1, 5, 2)
    return y.reshape(B, Cout, 2 * H, 2 * W)


def bilinear_resize(x, H, W):
    # F.upsample / F.interpolate(mode='bilinear', align_corners=False) equivalent.
    return jax.image.resize(x, x.shape[:-2] + (H, W), method="linear")


# ----------------------------------------------------------------------------
# Parameter generation and layer helpers
# ----------------------------------------------------------------------------
class ParamGen:
    def __init__(self, seed=0):
        self.key = jax.random.PRNGKey(seed)
        self.n = 0

    def normal(self, shape, std=0.05):
        k = jax.random.fold_in(self.key, self.n)
        self.n += 1
        return std * jax.random.normal(k, shape, jnp.float32)


def _bn_fold(cout):
    # TODO(synk): BatchNorm evaluated with running stats of a fresh torch init
    # (mean=0, var=1, gamma=1, beta=0) folded into the Pallas matmul kernel;
    # train-mode batch statistics are not reproduced.
    scale = jnp.full((cout,), 1.0 / jnp.sqrt(1.0 + BN_EPS), jnp.float32)
    shift = jnp.zeros((cout,), jnp.float32)
    return scale, shift


class ConvBnReLU:          # Conv2d(bias=False) + BN + ReLU
    def __init__(self, pg, cin, cout, k=3, stride=1, pad=1):
        self.w = pg.normal((cout, cin, k, k))
        self.scale, self.shift = _bn_fold(cout)
        self.stride, self.pad = stride, pad

    def __call__(self, x):
        return conv2d(x, self.w, self.scale, self.shift, self.stride, self.pad, "relu")


class ConvReLU:            # Conv2d(bias=False) + ReLU
    def __init__(self, pg, cin, cout, k, stride, pad):
        self.w = pg.normal((cout, cin, k, k))
        self.scale = jnp.ones((cout,), jnp.float32)
        self.shift = jnp.zeros((cout,), jnp.float32)
        self.stride, self.pad = stride, pad

    def __call__(self, x):
        return conv2d(x, self.w, self.scale, self.shift, self.stride, self.pad, "relu")


class Conv:                # plain nn.Conv2d
    def __init__(self, pg, cin, cout, k, stride, pad, bias=True):
        self.w = pg.normal((cout, cin, k, k))
        self.scale = jnp.ones((cout,), jnp.float32)
        self.b = pg.normal((cout,), 0.01) if bias else jnp.zeros((cout,), jnp.float32)
        self.stride, self.pad = stride, pad

    def __call__(self, x):
        return conv2d(x, self.w, self.scale, self.b, self.stride, self.pad, "none")


class DeconvBnReLU:        # ConvTranspose2d(bias=False) + BN + ReLU  (sub-pixel form)
    def __init__(self, pg, cin, cout, k=3, stride=2, pad=1, out_pad=1):
        assert (k, stride, pad, out_pad) == (3, 2, 1, 1)
        self.wp = _pack_deconv_s2_weight(pg.normal((cin, cout, k, k)))
        scale, shift = _bn_fold(cout)
        self.scale4 = jnp.tile(scale, 4)
        self.shift4 = jnp.tile(shift, 4)

    def __call__(self, x):
        return conv_transpose2d_s2(x, self.wp, self.scale4, self.shift4, "relu")


class Deconv:              # plain nn.ConvTranspose2d (bias=True)  (sub-pixel form)
    def __init__(self, pg, cin, cout, k=3, stride=2, pad=1, out_pad=1):
        assert (k, stride, pad, out_pad) == (3, 2, 1, 1)
        self.wp = _pack_deconv_s2_weight(pg.normal((cin, cout, k, k)))
        self.scale4 = jnp.ones((4 * cout,), jnp.float32)
        self.bias4 = jnp.tile(pg.normal((cout,), 0.01), 4)

    def __call__(self, x):
        return conv_transpose2d_s2(x, self.wp, self.scale4, self.bias4, "none")


class ConvGRUCell:
    # TODO(synk): ConvGRUCell source not provided; standard R-MVSNet / RED-Net formulation.
    def __init__(self, pg, cin, ch, k):
        self.ch, self.pad = ch, k // 2
        self.w_gates = pg.normal((2 * ch, cin + ch, k, k))
        self.b_gates = pg.normal((2 * ch,), 0.01)
        self.w_can = pg.normal((ch, cin + ch, k, k))
        self.b_can = pg.normal((ch,), 0.01)
        self.ones2 = jnp.ones((2 * ch,), jnp.float32)
        self.ones1 = jnp.ones((ch,), jnp.float32)

    def __call__(self, x, h):
        comb = jnp.concatenate([x, h], axis=1)
        gates = conv2d(comb, self.w_gates, self.ones2, self.b_gates, 1, self.pad, "sigmoid")
        r, u = gates[:, :self.ch], gates[:, self.ch:]
        comb2 = jnp.concatenate([x, r * h], axis=1)
        c = conv2d(comb2, self.w_can, self.ones1, self.b_can, 1, self.pad, "tanh")
        h_new = (1.0 - u) * h + u * c
        return h_new, h_new


# ----------------------------------------------------------------------------
# MVS helpers
# ----------------------------------------------------------------------------
@jax.jit
def homo_warping_float(src_fea, src_proj, ref_proj, depth_values):
    """Differentiable homography warp (bilinear, zeros padding, align_corners=True).
    src_fea: [B,C,H,W]; src_proj/ref_proj: [B,4,4] pre-combined K@[R|t]; depth: [B,D,H,W].
    Returns [B, C, D, H, W].
    """
    # TODO(synk): data-dependent bilinear gather (grid_sample) stays in plain JAX.
    B, C, H, W = src_fea.shape
    D = depth_values.shape[1]
    proj = src_proj @ jnp.linalg.inv(ref_proj)
    rot, trans = proj[:, :3, :3], proj[:, :3, 3]
    yy, xx = jnp.meshgrid(jnp.arange(H, dtype=jnp.float32),
                          jnp.arange(W, dtype=jnp.float32), indexing="ij")
    xyz = jnp.stack([xx.ravel(), yy.ravel(), jnp.ones(H * W, jnp.float32)], axis=0)
    xyz = jnp.broadcast_to(xyz[None], (B, 3, H * W))
    rot_xyz = rot @ xyz                                              # [B,3,HW]
    rot_depth_xyz = rot_xyz[:, :, None, :] * depth_values.reshape(B, 1, D, H * W)
    proj_xyz = rot_depth_xyz + trans[:, :, None, None]               # [B,3,D,HW]
    px = proj_xyz[:, 0] / proj_xyz[:, 2]
    py = proj_xyz[:, 1] / proj_xyz[:, 2]
    x0, y0 = jnp.floor(px), jnp.floor(py)
    x1, y1 = x0 + 1.0, y0 + 1.0
    wx1, wy1 = px - x0, py - y0
    wx0, wy0 = 1.0 - wx1, 1.0 - wy1
    flat = src_fea.reshape(B, C, H * W)

    def gather(ix, iy):
        valid = ((ix >= 0) & (ix <= W - 1) & (iy >= 0) & (iy <= H - 1)).astype(jnp.float32)
        idx = (jnp.clip(iy, 0, H - 1).astype(jnp.int32) * W
               + jnp.clip(ix, 0, W - 1).astype(jnp.int32)).reshape(B, 1, D * H * W)
        vals = jnp.take_along_axis(flat, jnp.broadcast_to(idx, (B, C, D * H * W)), axis=2)
        return vals * valid.reshape(B, 1, D * H * W)

    out = (gather(x0, y0) * (wx0 * wy0).reshape(B, 1, -1)
           + gather(x1, y0) * (wx1 * wy0).reshape(B, 1, -1)
           + gather(x0, y1) * (wx0 * wy1).reshape(B, 1, -1)
           + gather(x1, y1) * (wx1 * wy1).reshape(B, 1, -1))
    return out.reshape(B, C, D, H, W)


def get_depth_range_samples(cur_depth, ndepth, depth_interval_pixel, shape,
                            max_depth, min_depth):
    # TODO(synk): helper not in provided source; standard CasMVSNet formulation (no clamping).
    if cur_depth.ndim == 2:
        dmin = cur_depth[:, 0]
        dmax = cur_depth[:, -1]
        new_interval = (dmax - dmin) / (ndepth - 1)
        samples = dmin[:, None] + (jnp.arange(ndepth, dtype=jnp.float32)[None, :]
                                   * new_interval[:, None])
        samples = jnp.broadcast_to(samples[:, :, None, None],
                                   (shape[0], ndepth, shape[1], shape[2]))
    else:
        dmin = cur_depth - ndepth / 2 * depth_interval_pixel
        dmax = cur_depth + ndepth / 2 * depth_interval_pixel
        new_interval = (dmax - dmin) / (ndepth - 1)
        samples = dmin[:, None] + (jnp.arange(ndepth, dtype=jnp.float32).reshape(1, -1, 1, 1)
                                   * new_interval[:, None])
    return samples


# ----------------------------------------------------------------------------
# Network modules
# ----------------------------------------------------------------------------
class CostRegNet2D:
    def __init__(self, pg, in_channels, base_channels=8):
        C = in_channels
        self.conv0 = ConvBnReLU(pg, C, C)
        self.conv1 = ConvBnReLU(pg, C, C, stride=2)
        self.conv2 = ConvBnReLU(pg, C, C)
        self.conv3 = ConvBnReLU(pg, C, C, stride=2)
        self.conv4 = ConvBnReLU(pg, C, C)
        self.conv5 = ConvBnReLU(pg, C, C, stride=2)
        self.conv6 = ConvBnReLU(pg, C, C)
        self.conv7 = DeconvBnReLU(pg, C, C)
        self.conv9 = DeconvBnReLU(pg, C, C)
        self.conv11 = DeconvBnReLU(pg, C, C)
        self.prob = Conv(pg, C, C, 3, 1, 1, bias=True)

    def __call__(self, x):
        conv0 = self.conv0(x)
        conv2 = self.conv2(self.conv1(conv0))
        conv4 = self.conv4(self.conv3(conv2))
        x = self.conv6(self.conv5(conv4))
        x = conv4 + self.conv7(x)
        x = conv2 + self.conv9(x)
        x = conv0 + self.conv11(x)
        return self.prob(x)


class CostRegNetRED:
    def __init__(self, pg, in_channels, up=True, base_channels=8):
        bc = base_channels
        self.base_channels = bc
        self.up = up
        self.conv1 = ConvReLU(pg, in_channels, bc, 3, 1, 1)
        self.conv_gru1 = ConvGRUCell(pg, bc, bc, 3)
        self.conv2 = ConvReLU(pg, bc, bc * 2, 3, 2, 1)
        self.conv_gru2 = ConvGRUCell(pg, bc * 2, bc * 2, 3)
        self.upconv1 = Deconv(pg, bc * 2, bc, 3, 2, 1, 1)
        if up:
            self.upconv2d = Deconv(pg, bc, 1, 3, 2, 1, 1)
        else:
            self.upconv2d = Conv(pg, bc, 1, 3, 1, 1, bias=True)

    def __call__(self, volume):
        # volume: [B, D, C, H, W]  (depth-major layout produced by the fusion kernel)
        B, D, C, H, W = volume.shape
        bc = self.base_channels
        # conv1 batched over all depth slices (D folded into the conv batch/grid dim).
        conv_cost1 = self.conv1(volume.reshape(B * D, C, H, W)).reshape(B, D, bc, H, W)
        state1 = jnp.zeros((B, bc, H, W), jnp.float32)
        state2 = jnp.zeros((B, bc * 2, H // 2, W // 2), jnp.float32)
        reg1_list, reg2_list = [], []
        for d in range(D):                      # only the GRU recurrence stays per-depth
            reg_cost1, state1 = self.conv_gru1(conv_cost1[:, d], state1)
            conv_cost2 = self.conv2(reg_cost1)
            reg_cost2, state2 = self.conv_gru2(conv_cost2, state2)
            reg1_list.append(reg_cost1)
            reg2_list.append(reg_cost2)
        reg1_all = jnp.stack(reg1_list, axis=1).reshape(B * D, bc, H, W)
        reg2_all = jnp.stack(reg2_list, axis=1).reshape(B * D, bc * 2, H // 2, W // 2)
        up_cost1 = self.upconv1(reg2_all)                       # batched over D
        up_cost11 = jnp.maximum(up_cost1 + reg1_all, 0.0)
        reg_cost = self.upconv2d(up_cost11)                     # [B*D, 1, H', W']
        Hp, Wp = reg_cost.shape[-2], reg_cost.shape[-1]
        return reg_cost.reshape(B, D, Hp, Wp)


class DeConv2dFuse:
    def __init__(self, pg, in_channels, out_channels, k):
        self.deconv = DeconvBnReLU(pg, in_channels, out_channels, k, 2, 1, 1)
        self.conv = ConvBnReLU(pg, 2 * out_channels, out_channels, k, 1, 1)

    def __call__(self, x_pre, x):
        x = self.deconv(x)
        x = jnp.concatenate([x, x_pre], axis=1)
        return self.conv(x)


class FeatureNet:
    def __init__(self, pg, base_channels, num_stage=3, stride=4):
        bc = base_channels
        self.conv0 = [ConvBnReLU(pg, 3, bc, 3, 1, 1), ConvBnReLU(pg, bc, bc, 3, 1, 1)]
        self.conv1 = [ConvBnReLU(pg, bc, bc * 2, 5, 2, 2),
                      ConvBnReLU(pg, bc * 2, bc * 2, 3, 1, 1),
                      ConvBnReLU(pg, bc * 2, bc * 2, 3, 1, 1)]
        self.conv2 = [ConvBnReLU(pg, bc * 2, bc * 4, 5, 2, 2),
                      ConvBnReLU(pg, bc * 4, bc * 4, 3, 1, 1),
                      ConvBnReLU(pg, bc * 4, bc * 4, 3, 1, 1)]
        self.branch1_1 = (4, ConvBnReLU(pg, bc * 4, bc * 2, 1, 1, 0))
        self.branch1_2 = (8, ConvBnReLU(pg, bc * 4, bc * 2, 1, 1, 0))
        self.out1 = Conv(pg, bc * 8, bc * 4, 1, 1, 0, bias=False)
        self.deconv1 = DeConv2dFuse(pg, bc * 4, bc * 2, 3)
        self.deconv2 = DeConv2dFuse(pg, bc * 2, bc, 3)
        self.branch2_1 = (4, ConvBnReLU(pg, bc * 2, bc, 1, 1, 0))
        self.branch2_2 = (8, ConvBnReLU(pg, bc * 2, bc, 1, 1, 0))
        self.branch3_1 = (4, ConvBnReLU(pg, bc, bc // 2, 1, 1, 0))
        self.branch3_2 = (8, ConvBnReLU(pg, bc, bc // 2, 1, 1, 0))
        self.out2 = Conv(pg, bc * 4, bc * 2, 1, 1, 0, bias=False)
        self.out3 = Conv(pg, bc * 2, bc, 1, 1, 0, bias=False)
        self.out_channels = [4 * bc, 2 * bc, bc]

    @staticmethod
    def _branch(br, x):
        p, conv = br
        B, C, H, W = x.shape
        pooled = x.reshape(B, C, H // p, p, W // p, p).mean(axis=(3, 5))  # AvgPool2d(p)
        return bilinear_resize(conv(pooled), H, W)

    def __call__(self, x):
        c0 = x
        for layer in self.conv0:
            c0 = layer(c0)
        c1 = c0
        for layer in self.conv1:
            c1 = layer(c1)
        c2 = c1
        for layer in self.conv2:
            c2 = layer(c2)
        intra = c2
        outputs = {}
        b11 = self._branch(self.branch1_1, intra)
        b12 = self._branch(self.branch1_2, intra)
        outputs["stage1"] = self.out1(jnp.concatenate([b11, b12, intra], axis=1))
        intra = self.deconv1(c1, intra)
        b21 = self._branch(self.branch2_1, intra)
        b22 = self._branch(self.branch2_2, intra)
        outputs["stage2"] = self.out2(jnp.concatenate([b21, b22, intra], axis=1))
        intra = self.deconv2(c0, intra)
        b31 = self._branch(self.branch3_1, intra)
        b32 = self._branch(self.branch3_2, intra)
        outputs["stage3"] = self.out3(jnp.concatenate([b31, b32, intra], axis=1))
        return outputs


class DepthNet:
    def __init__(self, pg, in_depths, in_channels, in_up=True, base_channels=8):
        self.reg = CostRegNet2D(pg, in_depths, base_channels)
        self.reg_fuse = CostRegNetRED(pg, in_channels, in_up, base_channels)

    def __call__(self, features, proj_matrices, depth_values, num_depth,
                 confidence_map=None):
        assert depth_values.shape[1] == num_depth
        num_views = len(features)
        ref_feature, src_features = features[0], features[1:]
        ref_proj = proj_matrices[:, 0]
        src_projs = [proj_matrices[:, v] for v in range(1, num_views)]
        B, C, H, W = ref_feature.shape
        D = num_depth
        _, hwp, _ = _hw_tiling(H * W)
        # fused_interm kept padded & depth-major for the streaming accumulate kernel.
        fused = jnp.full((B, D, C, hwp), 1e-05, jnp.float32)
        weight_sum = jnp.zeros((B, 1, H, W), jnp.float32)
        pair_confidence = []
        pair_results = []
        if confidence_map is None:
            for src_fea, src_proj in zip(src_features, src_projs):
                warped = homo_warping_float(src_fea, src_proj, ref_proj, depth_values)
                warped1 = pallas_prod_mean(ref_feature, warped)          # [B,D,H,W]
                score_volume = self.reg(warped1)
                est_depth, conf = pallas_softmax_depth_conf(score_volume, depth_values)
                photometric_confidence = conf[:, None]                   # [B,1,H,W]
                pair_results.append(est_depth)
                pair_confidence.append(photometric_confidence)
                weight_sum = weight_sum + photometric_confidence
                fused = pallas_fused_accum(fused, ref_feature, warped,
                                           photometric_confidence)
        else:
            for src_fea, src_proj, confidence in zip(src_features, src_projs,
                                                     confidence_map):
                warped = homo_warping_float(src_fea, src_proj, ref_proj, depth_values)
                weight = bilinear_resize(confidence, H, W)               # [B,1,H,W]
                weight_sum = weight_sum + weight
                fused = pallas_fused_accum(fused, ref_feature, warped, weight)
            pair_confidence = confidence_map
        fused_v = (fused[..., :H * W].reshape(B, D, C, H, W)
                   / weight_sum[:, :, None])                             # [B,D,C,H,W]
        prob_scores = self.reg_fuse(fused_v)                             # [B,D,H',W']
        dv = depth_values
        if prob_scores.shape[-2:] != dv.shape[-2:]:
            # TODO(synk): depth_regression helper not in provided source; depth hypotheses
            # are bilinearly upsampled to the (2x) resolution of the RED prob volume.
            dv = bilinear_resize(dv, prob_scores.shape[-2], prob_scores.shape[-1])
        depth, photometric_confidence = pallas_softmax_depth_conf(prob_scores, dv)
        return {"depth": depth,
                "photometric_confidence": photometric_confidence,
                "pair_confidence": pair_confidence,
                "pair_result": pair_results}


class AdaMVSNet:
    def __init__(self, pg, ndepths=(8, 2, 2), depth_intervals_ratio=(4, 2, 1),
                 share_cr=False, cr_base_chs=(8, 8, 8)):
        self.ndepths = list(ndepths)
        self.depth_intervals_ratio = list(depth_intervals_ratio)
        self.num_stage = len(self.ndepths)
        self.stage_infos = {"stage1": {"scale": 4.0},
                            "stage2": {"scale": 2.0},
                            "stage3": {"scale": 1.0}}
        self.feature = FeatureNet(pg, base_channels=8, stride=4, num_stage=self.num_stage)
        oc = self.feature.out_channels
        self.DepthNet = [DepthNet(pg, self.ndepths[0], oc[0]),
                         DepthNet(pg, self.ndepths[0], oc[1]),
                         DepthNet(pg, self.ndepths[0], oc[2], in_up=False)]

    def __call__(self, imgs, proj_matrices, depth_values):
        depth_min = float(depth_values[0, 0])
        depth_max = float(depth_values[0, -2])
        depth_interval = float(depth_values[0, -1])
        depth_range = depth_values[:, 0:-1]
        B, V = int(imgs.shape[0]), int(imgs.shape[1])
        img_h, img_w = int(imgs.shape[3]), int(imgs.shape[4])
        # Feature extraction: all views in one pass (view folded into the batch/grid dim).
        feats_all = self.feature(imgs.reshape(B * V, int(imgs.shape[2]), img_h, img_w))
        features = []
        for v in range(V):
            features.append({k: val.reshape((B, V) + val.shape[1:])[:, v]
                             for k, val in feats_all.items()})
        outputs = {}
        depth, cur_depth = None, None
        pair_confidence = None
        for si in range(self.num_stage):
            feats = [f["stage{}".format(si + 1)] for f in features]
            projs = proj_matrices["stage{}".format(si + 1)]
            scale = self.stage_infos["stage{}".format(si + 1)]["scale"]
            if depth is not None:
                cur_depth = depth
                dh, dw = int(cur_depth.shape[1]), int(cur_depth.shape[2])
            else:
                cur_depth = depth_range
                dh, dw = img_h // int(scale), img_w // int(scale)
            drs = get_depth_range_samples(cur_depth, self.ndepths[si],
                                          self.depth_intervals_ratio[si] * depth_interval,
                                          (B, dh, dw), depth_max, depth_min)
            stage_out = self.DepthNet[si](feats, projs, drs, self.ndepths[si],
                                          confidence_map=pair_confidence)
            depth = stage_out["depth"]
            pair_confidence = stage_out["pair_confidence"]
            outputs["stage{}".format(si + 1)] = stage_out
            outputs.update(stage_out)
        return outputs


# ----------------------------------------------------------------------------
# Demo
# ----------------------------------------------------------------------------
if __name__ == "__main__":
    key = jax.random.PRNGKey(0)
    pg = ParamGen(0)
    model = AdaMVSNet(pg, ndepths=[8, 2, 2], depth_intervals_ratio=[4, 2, 1])

    B, V, H, W = 1, 3, 32, 32
    k_img, _ = jax.random.split(key)
    imgs = jax.random.uniform(k_img, (B, V, 3, H, W), jnp.float32)

    # depth_values: [B, Dinit + 1], last element = depth interval (as in the reference).
    depth_range = jnp.linspace(4.0, 10.0, 8, dtype=jnp.float32)
    depth_values = jnp.tile(jnp.concatenate([depth_range,
                                             jnp.array([0.8], jnp.float32)])[None], (B, 1))

    # Pre-combined per-stage projection matrices [B, V, 4, 4] (K @ [R|t]); ref = view 0.
    proj_matrices = {}
    for si, sc in zip(range(3), [4, 2, 1]):
        f = (W // sc) / 2.0
        c = (W // sc) / 2.0
        K4 = jnp.array([[f, 0, c, 0], [0, f, c, 0], [0, 0, 1, 0], [0, 0, 0, 1]],
                       jnp.float32)
        mats = []
        for v, tx in enumerate([0.0, 0.2, -0.2]):
            E = jnp.eye(4, dtype=jnp.float32).at[0, 3].set(tx)
            mats.append(K4 @ E)
        proj_matrices["stage{}".format(si + 1)] = jnp.tile(jnp.stack(mats, 0)[None],
                                                           (B, 1, 1, 1))

    outputs = model(imgs, proj_matrices, depth_values)
    for leaf in jax.tree_util.tree_leaves(outputs):
        jax.block_until_ready(leaf)
    print("KERNEL_OK")
</pallas_src>

<mosaic_0001>
module attributes {stable_mosaic.version = 11 : i64} {
  func.func @_conv_mm_kernel(%arg0: i32, %arg1: i32, %arg2: memref<8x27xbf16, #tpu.memory_space<vmem>>, %arg3: memref<1x27x1024xbf16, #tpu.memory_space<vmem>>, %arg4: memref<8x1xf32, #tpu.memory_space<vmem>>, %arg5: memref<8x1xf32, #tpu.memory_space<vmem>>, %arg6: memref<1x8x1024xf32, #tpu.memory_space<vmem>>) attributes {dimension_semantics = [#tpu.dimension_semantics<parallel>, #tpu.dimension_semantics<parallel>], iteration_bounds = array<i64: 3, 1>, scalar_prefetch = 0 : i64, scratch_operands = 0 : i64, tpu.core_type = #tpu.core_type<tc>, window_params = [{pipeline_mode = #tpu.pipeline_mode<synchronous>, transform_indices = @transform_0, window_bounds = array<i64: 8, 27>}, {transform_indices = @transform_1, window_bounds = array<i64: 1, 27, 1024>}, {pipeline_mode = #tpu.pipeline_mode<synchronous>, transform_indices = @transform_2, window_bounds = array<i64: 8, 1>}, {pipeline_mode = #tpu.pipeline_mode<synchronous>, transform_indices = @transform_3, window_bounds = array<i64: 8, 1>}, {transform_indices = @transform_4, window_bounds = array<i64: 1, 8, 1024>}]} {
    %c0 = arith.constant 0 : index
    %c0_0 = arith.constant 0 : index
    %0 = vector.load %arg2[%c0, %c0_0] : memref<8x27xbf16, #tpu.memory_space<vmem>>, vector<8x27xbf16>
    %c0_1 = arith.constant 0 : index
    %c0_2 = arith.constant 0 : index
    %c0_3 = arith.constant 0 : index
    %1 = vector.load %arg3[%c0_1, %c0_2, %c0_3] : memref<1x27x1024xbf16, #tpu.memory_space<vmem>>, vector<1x27x1024xbf16>
    %2 = vector.shape_cast %1 : vector<1x27x1024xbf16> to vector<27x1024xbf16>
    %cst = arith.constant dense<0.000000e+00> : vector<8x1024xf32>
    %3 = tpu.matmul %0, %2, %cst {dimension_numbers = #tpu.dot_dimension_numbers<[1], [0], [0], [1], [0, 0, 1, 1], [], []>} : vector<8x27xbf16>, vector<27x1024xbf16>, vector<8x1024xf32> -> vector<8x1024xf32>
    %c0_4 = arith.constant 0 : index
    %c0_5 = arith.constant 0 : index
    %4 = vector.load %arg4[%c0_4, %c0_5] : memref<8x1xf32, #tpu.memory_space<vmem>>, vector<8x1xf32>
    %5 = vector.broadcast %4 : vector<8x1xf32> to vector<8x1024xf32>
    %6 = arith.mulf %3, %5 : vector<8x1024xf32>
    %c0_6 = arith.constant 0 : index
    %c0_7 = arith.constant 0 : index
    %7 = vector.load %arg5[%c0_6, %c0_7] : memref<8x1xf32, #tpu.memory_space<vmem>>, vector<8x1xf32>
    %8 = vector.broadcast %7 : vector<8x1xf32> to vector<8x1024xf32>
    %9 = arith.addf %6, %8 : vector<8x1024xf32>
    %cst_8 = arith.constant 0.000000e+00 : f32
    %10 = vector.broadcast %cst_8 : f32 to vector<8x1024xf32>
    %11 = arith.maximumf %9, %10 : vector<8x1024xf32>
    %c0_9 = arith.constant 0 : index
    %c0_10 = arith.constant 0 : index
    %c0_11 = arith.constant 0 : index
    %12 = vector.load %arg6[%c0_9, %c0_10, %c0_11] : memref<1x8x1024xf32, #tpu.memory_space<vmem>>, vector<1x8x1024xf32>
    %13 = vector.shape_cast %12 : vector<1x8x1024xf32> to vector<8x1024xf32>
    %14 = vector.shape_cast %11 : vector<8x1024xf32> to vector<1x8x1024xf32>
    tpu.vector_store %arg6[%c0_9, %c0_10, %c0_11], %14 {strides = array<i32>} : memref<1x8x1024xf32, #tpu.memory_space<vmem>>, vector<1x8x1024xf32>,
    return
  }
  func.func @transform_0(%arg0: i32, %arg1: i32) -> (i32, i32) {
    %c0_i32 = arith.constant 0 : i32
    %c0_i32_0 = arith.constant 0 : i32
    %c0_i32_1 = arith.constant 0 : i32
    return %c0_i32, %c0_i32_0 : i32, i32
  }
  func.func @transform_1(%arg0: i32, %arg1: i32) -> (i32, i32, i32) {
    %c0_i32 = arith.constant 0 : i32
    %c0_i32_0 = arith.constant 0 : i32
    return %arg0, %c0_i32, %arg1 : i32, i32, i32
  }
  func.func @transform_2(%arg0: i32, %arg1: i32) -> (i32, i32) {
    %c0_i32 = arith.constant 0 : i32
    %c0_i32_0 = arith.constant 0 : i32
    %c0_i32_1 = arith.constant 0 : i32
    return %c0_i32, %c0_i32_0 : i32, i32
  }
  func.func @transform_3(%arg0: i32, %arg1: i32) -> (i32, i32) {
    %c0_i32 = arith.constant 0 : i32
    %c0_i32_0 = arith.constant 0 : i32
    %c0_i32_1 = arith.constant 0 : i32
    return %c0_i32, %c0_i32_0 : i32, i32
  }
  func.func @transform_4(%arg0: i32, %arg1: i32) -> (i32, i32, i32) {
    %c0_i32 = arith.constant 0 : i32
    %c0_i32_0 = arith.constant 0 : i32
    return %arg0, %c0_i32, %arg1 : i32, i32, i32
  }
}

</mosaic_0001>

<bundles_post_ra>
// kernel: conv2d.1
= control target key start
LH: loop header
LB: loop body
LE: loop exit
PB: predicated region body
PF: predicated region fallthrough
CT: control target
= control target key end

     0   :  { %s773_s15 = smov 0   ;;  %s775_s16 = smov 0   ;;  %s871_s0 = inlined_call_operand.vmem [shape: bf16[8,27], index: 0, kind: input, shape index: {}]   ;;  %s872_s1 = inlined_call_operand.vmem [shape: bf16[3,27,1024], index: 1, kind: input, shape index: {}]   ;;  %s873_s2 = inlined_call_operand.vmem [shape: f32[8,1], index: 2, kind: input, shape index: {}]   ;;  %s874_s3 = inlined_call_operand.vmem [shape: f32[8,1], index: 3, kind: input, shape index: {}]   ;;  %s875_s4 = inlined_call_operand.vmem [shape: f32[3,8,1024], index: 4, kind: output, shape index: {}]  }
   0x1   :  { %s777_s17 = smov 0  }
   0x2 LB: > { %s26_s18 = sadd.s32 1, %s740_s16  ;;  %p598_p0 = scmp.ge.s32.totalorder %s744_s17, 1  ;;  %s744_s17 = sphi %s777_s17, %s14_s17   ;;  %s740_s16 = sphi %s775_s16, %s877_s16   ;;  %s736_s15 = sphi %s773_s15, %s876_s15  }
   0x3   : > { %p28_p1 = scmp.ge.s32.totalorder %s26_s18, 3  ;;  %p183_p2 = scmp.lt.s32.totalorder %s744_s17, 4 }
   0x5   : > { %s879_s18 = smov (%p28_p1, %s26_s18), 0  ;;  %p184_p3 = pnand %p598_p0, %p183_p2 }
   0x6   : > { %p218_p4 = scmp.lt.s32.totalorder (!%p184_p3), %s736_s15, 2 }
   0x7   : > { %187 = sbr.rel (%p184_p3) target bundleno = 186 (0xba), region = 36 }
   0xc   : > { %vm331_vm0 = vcmask 1044480   ;;  %v463_v0 = vld [vmem:[%s873_s2] sm:$0xff]  ;;  %s881_s15 = smov (!%p218_p4, %s736_s15), 2  ;;  %vm332_vm1 = vcmask 1045504   ;;  %v746_v1 = vmov 65535   ;;  %v747_v3 = vmov 0  }
   0xd   : > { %v333_v2 = vsel %vm331_vm0, 4294967295, %v746_v1  ;;  %721 = vset.pattern.permute.xlu0 %v747_v3  ;;  %s677_s21 = sshll.u32 %s881_s15, 7  ;;  %v477_v8 = vld [vmem:[%s874_s3] sm:$0xff]  ;;  %vm327_vm2 = vcmask 220160   ;;  %s678_s29 = sshll.u32 %s881_s15, 6 }
   0xe   : > { %466 = vperm.xlu0 %721, %v463_v0   ;;  %s800_s24 = scalar_lea.vmem %s872_s1, %s677_s21  ;;  %v334_v4 = vsel %vm332_vm1, %v333_v2, 0  ;;  %v238_v44 = vld [vmem:[%s871_s0] sm:$0xf]  ;;  %s852_s6 = scalar_lea.vmem %s875_s4, %s678_s29 }
   0xf   : > { %v637_v5 = vld [vmem:[%s800_s24 + $0x40] sm:$0xf]  ;;  %v687_v7 = vld [vmem:[%s800_s24 + $0x44] sm:$0xf]  ;;  %v645_v11 = vld [vmem:[%s800_s24 + $0x48] sm:$0xf] }
  0x10   : > { %v691_v6 = vld [vmem:[%s800_s24 + $0x5c] sm:$0x30]  ;;  %v639_v10 = vld [vmem:[%s800_s24 + $0x60] sm:$0x30]  ;;  %v692_v12 = vld [vmem:[%s800_s24 + $0x64] sm:$0x30] }
  0x11   : > { %v638_v9 = vor.u32 %v691_v6, %v637_v5  ;;  %v642_v13 = vor.u32 %v687_v7, %v639_v10  ;;  %v646_v14 = vor.u32 %v692_v12, %v645_v11  ;;  %v688_v15 = vld [vmem:[%s800_s24 + $0x4c] sm:$0xf]  ;;  %v605_v17 = vld [vmem:[%s800_s24] sm:$0xf]  ;;  %v679_v21 = vld [vmem:[%s800_s24 + $0x4] sm:$0xf] }
  0x12   : > { %v647_v16 = vld [vmem:[%s800_s24 + $0x68] sm:$0x30]  ;;  %v683_v20 = vld [vmem:[%s800_s24 + $0x1c] sm:$0xf0]  ;;  %v607_v22 = vld [vmem:[%s800_s24 + $0x20] sm:$0xf0] }
  0x13   : > { %v336_v18 = vand.u32 %v638_v9, %v334_v4  ;;  %v650_v19 = vor.u32 %v688_v15, %v647_v16  ;;  %v339_v23 = vand.u32 %v642_v13, %v334_v4  ;;  %v342_v24 = vand.u32 %v646_v14, %v334_v4  ;;  %v613_v25 = vld [vmem:[%s800_s24 + $0x8] sm:$0xf]  ;;  %v680_v27 = vld [vmem:[%s800_s24 + $0xc] sm:$0xf]  ;;  %v661_v31 = vld [vmem:[%s800_s24 + $0x58] sm:$0xf] }
  0x14   : > { %v684_v26 = vld [vmem:[%s800_s24 + $0x24] sm:$0xf0]  ;;  %v606_v29 = vor.u32 %v683_v20, %v605_v17  ;;  %v615_v30 = vld [vmem:[%s800_s24 + $0x28] sm:$0xf0]  ;;  %v694_v32 = vld [vmem:[%s800_s24 + $0x74] sm:$0x30]  ;;  %v610_v33 = vor.u32 %v679_v21, %v607_v22 }
  0x15   : > { %365 = vmatpush.bf16.msra.mxu0 %v336_v18  ;;  %v345_v28 = vand.u32 %v650_v19, %v334_v4  ;;  %378 = vmatpush.bf16.msra.mxu1 %v339_v23  ;;  %v614_v34 = vor.u32 %v684_v26, %v613_v25  ;;  %v662_v35 = vor.u32 %v694_v32, %v661_v31  ;;  %v690_v36 = vld [vmem:[%s800_s24 + $0x5c] sm:$0xf]  ;;  %v653_v38 = vld [vmem:[%s800_s24 + $0x50] sm:$0xf]  ;;  %v689_v42 = vld [vmem:[%s800_s24 + $0x54] sm:$0xf] }
  0x16   : > { %480 = vperm.xlu0 %721, %v477_v8   ;;  %391 = vmatpush.bf16.msra.mxu2 %v342_v24  ;;  %v663_v37 = vld [vmem:[%s800_s24 + $0x78] sm:$0x30]  ;;  %v618_v39 = vor.u32 %v680_v27, %v615_v30  ;;  %v693_v41 = vld [vmem:[%s800_s24 + $0x6c] sm:$0x30]  ;;  %v655_v43 = vld [vmem:[%s800_s24 + $0x70] sm:$0x30] }
  0x17   : > { %404 = vmatpush.bf16.msra.mxu3 %v345_v28  ;;  %v666_v40 = vor.u32 %v690_v36, %v663_v37  ;;  %v354_v45 = vand.u32 %v662_v35, %v334_v4  ;;  %v654_v46 = vor.u32 %v693_v41, %v653_v38  ;;  %v658_v47 = vor.u32 %v689_v42, %v655_v43  ;;  %v629_v48 = vld [vmem:[%s800_s24 + $0x18] sm:$0xf]  ;;  %v682_v51 = vld [vmem:[%s800_s24 + $0x1c] sm:$0xf]  ;;  %v621_v56 = vld [vmem:[%s800_s24 + $0x10] sm:$0xf] }
  0x18   : > { %v686_v49 = vld [vmem:[%s800_s24 + $0x34] sm:$0xf0]  ;;  %v631_v52 = vld [vmem:[%s800_s24 + $0x38] sm:$0xf0]  ;;  %v685_v57 = vld [vmem:[%s800_s24 + $0x2c] sm:$0xf0] }
  0x19   : > { %366 = vmatpush.bf16.msra.mxu0 %v606_v29  ;;  %v357_v50 = vand.u32 %v666_v40, %v334_v4  ;;  %379 = vmatpush.bf16.msra.mxu1 %v610_v33  ;;  %v348_v53 = vand.u32 %v654_v46, %v334_v4  ;;  %v351_v54 = vand.u32 %v658_v47, %v334_v4  ;;  %v681_v59 = vld [vmem:[%s800_s24 + $0x14] sm:$0xf] }
  0x1a   : > { %392 = vmatpush.bf16.msra.mxu2 %v614_v34  ;;  %v630_v55 = vor.u32 %v686_v49, %v629_v48  ;;  %v634_v58 = vor.u32 %v682_v51, %v631_v52  ;;  %v623_v60 = vld [vmem:[%s800_s24 + $0x30] sm:$0xf0]  ;;  %v622_v61 = vor.u32 %v685_v57, %v621_v56 }
  0x1b   : > { %405 = vmatpush.bf16.msra.mxu3 %v618_v39  ;;  %v626_v62 = vor.u32 %v681_v59, %v623_v60 }
  0x1c   : > { %667 = vmatmul.msk.bf16.vlgmr.msra.gmra.mxu0 %vm327_vm2, %v238_v44  ;;  %668 = vmatmul.msk.bf16.vlgmr.msra.gmra.mxu1 %vm327_vm2, %v238_v44 }
  0x1d   : > { %669 = vmatmul.msk.bf16.vlgmr.msra.gmra.mxu2 %vm327_vm2, %v238_v44  ;;  %417 = vmatpush.bf16.msrb.mxu0 %v348_v53 }
  0x1e   : > { %443 = vmatpush.bf16.msrb.mxu2 %v354_v45  ;;  %670 = vmatmul.msk.bf16.vlgmr.msra.gmra.mxu3 %vm327_vm2, %v238_v44 }
  0x1f   : > { %456 = vmatpush.bf16.msrb.mxu3 %v357_v50  ;;  %430 = vmatpush.bf16.msrb.mxu1 %v351_v54 }
  0x21   : > { %418 = vmatpush.bf16.msrb.mxu0 %v622_v61 }
  0x22   : > { %444 = vmatpush.bf16.msrb.mxu2 %v630_v55 }
  0x23   : > { %457 = vmatpush.bf16.msrb.mxu3 %v634_v58  ;;  %431 = vmatpush.bf16.msrb.mxu1 %v626_v62 }
  0x2c   : > { %671 = vmatmul.msk.bf16.vlgmr.msrb.gmra.mxu0 %vm327_vm2, %v238_v44  ;;  %672 = vmatmul.msk.bf16.vlgmr.msrb.gmra.mxu1 %vm327_vm2, %v238_v44 }
  0x2d   : > { %673 = vmatmul.msk.bf16.vlgmr.msrb.gmra.mxu2 %vm327_vm2, %v238_v44 }
  0x2e   : > { %674 = vmatmul.msk.bf16.vlgmr.msrb.gmra.mxu3 %vm327_vm2, %v238_v44 }
  0x80   : > { %v467_v63 = vpop.permute.xlu0 %466 }
  0x88   : > { %v481_v1 = vpop.permute.xlu0 %480 }
  0x99   : > { %v368_v0 = vpop.f32.mrf.mxu0  ;;  %v381_v3 = vpop.f32.mrf.mxu1 }
  0x9a   : > { %v469_v2 = vmul.f32 %v467_v63, %v368_v0  ;;  %v470_v4 = vmul.f32 %v467_v63, %v381_v3 }
  0x9c   : > { %v483_v5 = vadd.f32 %v481_v1, %v469_v2  ;;  %v484_v6 = vadd.f32 %v481_v1, %v470_v4 }
  0x9e   : > { %v491_v7 = vmax.f32 %v483_v5, 0.0  ;;  %v492_v8 = vmax.f32 %v484_v6, 0.0 }
  0xa0   : > { %v394_v9 = vpop.f32.mrf.mxu2  ;;  %499 = vst [vmem:[%s852_s6] sm:$0xff] %v491_v7 }
  0xa1   : > { %v471_v10 = vmul.f32 %v467_v63, %v394_v9  ;;  %v407_v11 = vpop.f32.mrf.mxu3  ;;  %500 = vst [vmem:[%s852_s6 + $0x8] sm:$0xff] %v492_v8  ;;  %v370_v12 = vpop.f32.mrf.mxu0 }
  0xa2   : > { %v472_v13 = vmul.f32 %v467_v63, %v407_v11  ;;  %v383_v14 = vpop.f32.mrf.mxu1 }
  0xa3   : > { %v485_v15 = vadd.f32 %v481_v1, %v471_v10 }
  0xa4   : > { %v486_v16 = vadd.f32 %v481_v1, %v472_v13 }
  0xa5   : > { %v493_v17 = vmax.f32 %v485_v15, 0.0 }
  0xa6   : > { %v494_v18 = vmax.f32 %v486_v16, 0.0 }
  0xa7   : > { %501 = vst [vmem:[%s852_s6 + $0x10] sm:$0xff] %v493_v17 }
  0xa8   : > { %502 = vst [vmem:[%s852_s6 + $0x18] sm:$0xff] %v494_v18  ;;  %v396_v19 = vpop.f32.mrf.mxu2 }
  0xa9   : > { %v409_v20 = vpop.f32.mrf.mxu3  ;;  %v420_v21 = vpop.f32.mrf.mxu0 }
  0xaa   : > { %v473_v22 = vmul.f32 %v467_v63, %v420_v21  ;;  %v433_v23 = vpop.f32.mrf.mxu1 }
  0xab   : > { %v474_v24 = vmul.f32 %v467_v63, %v433_v23 }
  0xac   : > { %v487_v25 = vadd.f32 %v481_v1, %v473_v22 }
  0xad   : > { %v488_v26 = vadd.f32 %v481_v1, %v474_v24 }
  0xae   : > { %v495_v27 = vmax.f32 %v487_v25, 0.0 }
  0xaf   : > { %v496_v28 = vmax.f32 %v488_v26, 0.0 }
  0xb0   : > { %503 = vst [vmem:[%s852_s6 + $0x20] sm:$0xff] %v495_v27  ;;  %v446_v29 = vpop.f32.mrf.mxu2 }
  0xb1   : > { %504 = vst [vmem:[%s852_s6 + $0x28] sm:$0xff] %v496_v28  ;;  %v475_v30 = vmul.f32 %v467_v63, %v446_v29  ;;  %v459_v31 = vpop.f32.mrf.mxu3  ;;  %v422_v32 = vpop.f32.mrf.mxu0 }
  0xb2   : > { %v476_v33 = vmul.f32 %v467_v63, %v459_v31  ;;  %v435_v34 = vpop.f32.mrf.mxu1 }
  0xb3   : > { %v489_v35 = vadd.f32 %v481_v1, %v475_v30 }
  0xb4   : > { %v490_v36 = vadd.f32 %v481_v1, %v476_v33 }
  0xb5   : > { %v497_v37 = vmax.f32 %v489_v35, 0.0 }
  0xb6   : > { %v498_v38 = vmax.f32 %v490_v36, 0.0 }
  0xb7   : > { %505 = vst [vmem:[%s852_s6 + $0x30] sm:$0xff] %v497_v37 }
  0xb8   : > { %506 = vst [vmem:[%s852_s6 + $0x38] sm:$0xff] %v498_v38  ;;  %v448_v39 = vpop.f32.mrf.mxu2 }
  0xb9   : > { %v461_v40 = vpop.f32.mrf.mxu3 }
  0xba PF: > { %s14_s17 = sadd.s32 1, %s744_s17   ;;  %s876_s15 = smov %s740_s16 }
  0xbb   : > { %p11_p5 = scmp.ge.s32.totalorder %s14_s17, 5   ;;  %s877_s16 = smov %s879_s18 }
  0xbd   :  { %13 = sbr.rel (!%p11_p5) target bundleno = 2 (0x2), region = 66 }

</bundles_post_ra>
